<compile_context>
chip_gen: v6e
topology: v6e:2x2x1
jax: 0.10.0
libtpu: 0.0.40
codegen_flags: <defaults>
</compile_context>

<pallas_src>
import functools

import jax
import jax.numpy as jnp
from jax.experimental import pallas as pl
from jax.experimental.pallas import tpu as pltpu

LANES = 128


def _cdiv(a, b):
    return -(-a // b)


def _round_up(a, m):
    return _cdiv(a, m) * m


# -----------------------------------------------------------------------------
# Kernel: full forward pass, batch lane-dense, weights as SMEM scalars,
# inner sublane-chunk loop to bound vreg live ranges.
# -----------------------------------------------------------------------------
def mlp_kernel(p_ref, x_ref, o_ref, *, num_inputs, hidden, chunk):
    D, H = num_inputs, hidden
    ts = o_ref.shape[0]
    n_chunks = ts // chunk

    # Flat-parameter offsets (PyTorch layout: weight[j, k] row-major, then bias[j]).
    o_w1 = 0
    o_b1 = o_w1 + H * D
    o_w2 = o_b1 + H
    o_b2 = o_w2 + H * H
    o_w3 = o_b2 + H
    o_b3 = o_w3 + H

    # Hoist all 61 scalar weight/bias reads out of the chunk loop (SMEM scalars).
    w1 = [[p_ref[o_w1 + j * D + k] for k in range(D)] for j in range(H)]
    b1 = [p_ref[o_b1 + j] for j in range(H)]
    w2 = [[p_ref[o_w2 + j * H + k] for k in range(H)] for j in range(H)]
    b2 = [p_ref[o_b2 + j] for j in range(H)]
    w3 = [p_ref[o_w3 + k] for k in range(H)]
    b3 = p_ref[o_b3]

    # Static per-feature views of the (D, ts, 128) tile: zero runtime cost.
    x_views = [x_ref.at[k] for k in range(D)]

    def compute_chunk(r0):
        xs = [x_views[k][pl.ds(r0, chunk), :] for k in range(D)]   # (chunk, 128)

        # Layer 1: h1[j] = tanh(sum_k w1[j,k] * x[k] + b1[j])  (VPU FMAs + EUP tanh)
        # TODO(synk): verify jnp.tanh lowers to the native EUP tanh (not a
        # composed exp/rational VALU sequence) via pl.lower_as_mlir.
        h1 = []
        for j in range(H):
            acc = w1[j][0] * xs[0]
            for k in range(1, D):
                acc = acc + w1[j][k] * xs[k]
            h1.append(jnp.tanh(acc + b1[j]))

        # Layer 2: h2[j] = tanh(sum_k w2[j,k] * h1[k] + b2[j])
        h2 = []
        for j in range(H):
            acc = w2[j][0] * h1[0]
            for k in range(1, H):
                acc = acc + w2[j][k] * h1[k]
            h2.append(jnp.tanh(acc + b2[j]))

        # Layer 3 (linear): y = sum_k w3[k] * h2[k] + b3
        acc = w3[0] * h2[0]
        for k in range(1, H):
            acc = acc + w3[k] * h2[k]
        o_ref[pl.ds(r0, chunk), :] = (acc + b3).astype(o_ref.dtype)  # dense lane store

    if n_chunks == 1:
        compute_chunk(0)
    else:
        def body(c, carry):
            compute_chunk(pl.multiple_of(c * chunk, chunk))
            return carry

        jax.lax.fori_loop(0, n_chunks, body, 0, unroll=2)


# -----------------------------------------------------------------------------
# Tiling: fewer, fatter grid steps; even division; >=2 steps for v7x megacore.
# -----------------------------------------------------------------------------
def _tiling(B, max_rows_per_tile):
    rows = _cdiv(B, LANES)                       # batch rows of 128 lanes each
    n_steps = _cdiv(rows, max_rows_per_tile)
    if n_steps == 1 and rows > 8:
        n_steps = 2                              # let v7x's 2 TCs both get work
    per = _cdiv(rows, n_steps)
    chunk = 32 if per >= 32 else 8               # inner vreg-chunk height (8-aligned)
    ts = _round_up(per, chunk)                   # tiles divide work: waste < chunk rows/step
    return n_steps, ts, chunk


# -----------------------------------------------------------------------------
# Fast path: feature-major (num_inputs, B) input -> no transpose HBM pass.
# -----------------------------------------------------------------------------
def mlp_base_forward_fm(x_fm, params_flat, *, batch=None, hidden=5,
                        max_rows_per_tile=512):
    """x_fm: (num_inputs, B) f32 feature-major.  Returns (batch, 1) f32."""
    D, B = x_fm.shape
    if batch is None:
        batch = B

    n_steps, ts, chunk = _tiling(B, max_rows_per_tile)
    rows_pad = n_steps * ts
    B_pad = rows_pad * LANES
    if B_pad != B:
        x_fm = jnp.pad(x_fm, ((0, 0), (0, B_pad - B)))
    x_r = x_fm.reshape(D, rows_pad, LANES)       # pure reshape (no transpose pass)

    kernel = functools.partial(mlp_kernel, num_inputs=D, hidden=hidden, chunk=chunk)

    out = pl.pallas_call(
        kernel,
        out_shape=jax.ShapeDtypeStruct((rows_pad, LANES), x_fm.dtype),
        grid_spec=pltpu.PrefetchScalarGridSpec(
            num_scalar_prefetch=1,               # params -> SMEM once, before the grid
            grid=(n_steps,),
            in_specs=[pl.BlockSpec((D, ts, LANES), lambda i, p: (0, i, 0))],
            out_specs=pl.BlockSpec((ts, LANES), lambda i, p: (i, 0)),
        ),
        compiler_params=pltpu.CompilerParams(
            dimension_semantics=("parallel",),   # batch steps shard across TCs (v7x)
        ),
    )(params_flat, x_r)

    # (rows_pad, 128) -> (B_pad, 1) -> drop padding.
    return out.reshape(B_pad, 1)[:batch]


# -----------------------------------------------------------------------------
# Drop-in for MLPBase.forward: batch-major (B, num_inputs).  NOTE: pays one
# extra HBM transpose pass; produce x feature-major upstream when possible.
# -----------------------------------------------------------------------------
def mlp_base_forward(x, params_flat, *, hidden=5, max_rows_per_tile=512):
    B, _ = x.shape
    return mlp_base_forward_fm(x.T, params_flat, batch=B, hidden=hidden,
                               max_rows_per_tile=max_rows_per_tile)


# -----------------------------------------------------------------------------
# Parameter init mirroring init_normc_ (normal(0,1), row-normalized), zero biases.
# Weights kept in PyTorch (out, in) layout.
# -----------------------------------------------------------------------------
def init_normc(key, out_features, in_features, gain=1.0):
    w = jax.random.normal(key, (out_features, in_features), dtype=jnp.float32)
    return w * (gain / jnp.sqrt(jnp.sum(w * w, axis=1, keepdims=True)))


def make_params(key, num_inputs, hidden=5):
    k1, k2, k3 = jax.random.split(key, 3)
    w1 = init_normc(k1, hidden, num_inputs)          # (5, num_inputs)
    b1 = jnp.zeros((hidden,), dtype=jnp.float32)
    w2 = init_normc(k2, hidden, hidden)              # (5, 5)
    b2 = jnp.zeros((hidden,), dtype=jnp.float32)
    w3 = init_normc(k3, 1, hidden)                   # (1, 5)
    b3 = jnp.zeros((1,), dtype=jnp.float32)
    return (w1, b1, w2, b2, w3, b3)


def pack_params(params):
    return jnp.concatenate([p.reshape(-1) for p in params]).astype(jnp.float32)


def mlp_base_reference(x, params):
    w1, b1, w2, b2, w3, b3 = params
    h = jnp.tanh(x @ w1.T + b1)
    h = jnp.tanh(h @ w2.T + b2)
    return h @ w3.T + b3


if __name__ == "__main__":
    key = jax.random.PRNGKey(0)
    k_params, k_x1, k_x2, k_x3, k_x4 = jax.random.split(key, 5)

    num_inputs = 4
    params = make_params(k_params, num_inputs)
    params_flat = pack_params(params)

    # 1) Drop-in batch-major path, multi-step grid (2 steps), no padding.
    x1 = jax.random.normal(k_x1, (2048, num_inputs), dtype=jnp.float32)
    out1 = jax.block_until_ready(mlp_base_forward(x1, params_flat))
    ref1 = mlp_base_reference(x1, params)
    assert out1.shape == (2048, 1)
    assert jnp.allclose(out1, ref1, atol=2e-5, rtol=1e-5), "mismatch (B=2048)"

    # 2) Batch not a multiple of 128 -> exercises the zero-padding path.
    x2 = jax.random.normal(k_x2, (300, num_inputs), dtype=jnp.float32)
    out2 = jax.block_until_ready(mlp_base_forward(x2, params_flat))
    ref2 = mlp_base_reference(x2, params)
    assert out2.shape == (300, 1)
    assert jnp.allclose(out2, ref2, atol=2e-5, rtol=1e-5), "mismatch (B=300)"

    # 3) Feature-major fast path (no transpose/pad pass), multi-chunk inner loop.
    x3_fm = jax.random.normal(k_x3, (num_inputs, 4096), dtype=jnp.float32)
    out3 = jax.block_until_ready(mlp_base_forward_fm(x3_fm, params_flat))
    ref3 = mlp_base_reference(x3_fm.T, params)
    assert out3.shape == (4096, 1)
    assert jnp.allclose(out3, ref3, atol=2e-5, rtol=1e-5), "mismatch (fm B=4096)"

    # 4) Larger feature-major batch -> exercises the 32-sublane chunk path.
    x4_fm = jax.random.normal(k_x4, (num_inputs, 16384), dtype=jnp.float32)
    out4 = jax.block_until_ready(mlp_base_forward_fm(x4_fm, params_flat))
    ref4 = mlp_base_reference(x4_fm.T, params)
    assert out4.shape == (16384, 1)
    assert jnp.allclose(out4, ref4, atol=2e-5, rtol=1e-5), "mismatch (fm B=16384)"

    print("KERNEL_OK")
</pallas_src>

<mosaic_0001>
module attributes {stable_mosaic.version = 11 : i64} {
  func.func @mlp_kernel(%arg0: i32, %arg1: memref<61xf32, #tpu.memory_space<smem>>, %arg2: memref<4x8x128xf32, #tpu.memory_space<vmem>>, %arg3: memref<8x128xf32, #tpu.memory_space<vmem>>) attributes {dimension_semantics = [#tpu.dimension_semantics<parallel>], iteration_bounds = array<i64: 2>, scalar_prefetch = 1 : i64, scratch_operands = 0 : i64, tpu.core_type = #tpu.core_type<tc>, window_params = [{transform_indices = @transform_0, window_bounds = array<i64: 4, 8, 128>}, {transform_indices = @transform_1, window_bounds = array<i64: 8, 128>}]} {
    %c0 = arith.constant 0 : index
    %0 = memref.load %arg1[%c0] : memref<61xf32, #tpu.memory_space<smem>>
    %c1 = arith.constant 1 : index
    %1 = memref.load %arg1[%c1] : memref<61xf32, #tpu.memory_space<smem>>
    %c2 = arith.constant 2 : index
    %2 = memref.load %arg1[%c2] : memref<61xf32, #tpu.memory_space<smem>>
    %c3 = arith.constant 3 : index
    %3 = memref.load %arg1[%c3] : memref<61xf32, #tpu.memory_space<smem>>
    %c4 = arith.constant 4 : index
    %4 = memref.load %arg1[%c4] : memref<61xf32, #tpu.memory_space<smem>>
    %c5 = arith.constant 5 : index
    %5 = memref.load %arg1[%c5] : memref<61xf32, #tpu.memory_space<smem>>
    %c6 = arith.constant 6 : index
    %6 = memref.load %arg1[%c6] : memref<61xf32, #tpu.memory_space<smem>>
    %c7 = arith.constant 7 : index
    %7 = memref.load %arg1[%c7] : memref<61xf32, #tpu.memory_space<smem>>
    %c8 = arith.constant 8 : index
    %8 = memref.load %arg1[%c8] : memref<61xf32, #tpu.memory_space<smem>>
    %c9 = arith.constant 9 : index
    %9 = memref.load %arg1[%c9] : memref<61xf32, #tpu.memory_space<smem>>
    %c10 = arith.constant 10 : index
    %10 = memref.load %arg1[%c10] : memref<61xf32, #tpu.memory_space<smem>>
    %c11 = arith.constant 11 : index
    %11 = memref.load %arg1[%c11] : memref<61xf32, #tpu.memory_space<smem>>
    %c12 = arith.constant 12 : index
    %12 = memref.load %arg1[%c12] : memref<61xf32, #tpu.memory_space<smem>>
    %c13 = arith.constant 13 : index
    %13 = memref.load %arg1[%c13] : memref<61xf32, #tpu.memory_space<smem>>
    %c14 = arith.constant 14 : index
    %14 = memref.load %arg1[%c14] : memref<61xf32, #tpu.memory_space<smem>>
    %c15 = arith.constant 15 : index
    %15 = memref.load %arg1[%c15] : memref<61xf32, #tpu.memory_space<smem>>
    %c16 = arith.constant 16 : index
    %16 = memref.load %arg1[%c16] : memref<61xf32, #tpu.memory_space<smem>>
    %c17 = arith.constant 17 : index
    %17 = memref.load %arg1[%c17] : memref<61xf32, #tpu.memory_space<smem>>
    %c18 = arith.constant 18 : index
    %18 = memref.load %arg1[%c18] : memref<61xf32, #tpu.memory_space<smem>>
    %c19 = arith.constant 19 : index
    %19 = memref.load %arg1[%c19] : memref<61xf32, #tpu.memory_space<smem>>
    %c20 = arith.constant 20 : index
    %20 = memref.load %arg1[%c20] : memref<61xf32, #tpu.memory_space<smem>>
    %c21 = arith.constant 21 : index
    %21 = memref.load %arg1[%c21] : memref<61xf32, #tpu.memory_space<smem>>
    %c22 = arith.constant 22 : index
    %22 = memref.load %arg1[%c22] : memref<61xf32, #tpu.memory_space<smem>>
    %c23 = arith.constant 23 : index
    %23 = memref.load %arg1[%c23] : memref<61xf32, #tpu.memory_space<smem>>
    %c24 = arith.constant 24 : index
    %24 = memref.load %arg1[%c24] : memref<61xf32, #tpu.memory_space<smem>>
    %c25 = arith.constant 25 : index
    %25 = memref.load %arg1[%c25] : memref<61xf32, #tpu.memory_space<smem>>
    %c26 = arith.constant 26 : index
    %26 = memref.load %arg1[%c26] : memref<61xf32, #tpu.memory_space<smem>>
    %c27 = arith.constant 27 : index
    %27 = memref.load %arg1[%c27] : memref<61xf32, #tpu.memory_space<smem>>
    %c28 = arith.constant 28 : index
    %28 = memref.load %arg1[%c28] : memref<61xf32, #tpu.memory_space<smem>>
    %c29 = arith.constant 29 : index
    %29 = memref.load %arg1[%c29] : memref<61xf32, #tpu.memory_space<smem>>
    %c30 = arith.constant 30 : index
    %30 = memref.load %arg1[%c30] : memref<61xf32, #tpu.memory_space<smem>>
    %c31 = arith.constant 31 : index
    %31 = memref.load %arg1[%c31] : memref<61xf32, #tpu.memory_space<smem>>
    %c32 = arith.constant 32 : index
    %32 = memref.load %arg1[%c32] : memref<61xf32, #tpu.memory_space<smem>>
    %c33 = arith.constant 33 : index
    %33 = memref.load %arg1[%c33] : memref<61xf32, #tpu.memory_space<smem>>
    %c34 = arith.constant 34 : index
    %34 = memref.load %arg1[%c34] : memref<61xf32, #tpu.memory_space<smem>>
    %c35 = arith.constant 35 : index
    %35 = memref.load %arg1[%c35] : memref<61xf32, #tpu.memory_space<smem>>
    %c36 = arith.constant 36 : index
    %36 = memref.load %arg1[%c36] : memref<61xf32, #tpu.memory_space<smem>>
    %c37 = arith.constant 37 : index
    %37 = memref.load %arg1[%c37] : memref<61xf32, #tpu.memory_space<smem>>
    %c38 = arith.constant 38 : index
    %38 = memref.load %arg1[%c38] : memref<61xf32, #tpu.memory_space<smem>>
    %c39 = arith.constant 39 : index
    %39 = memref.load %arg1[%c39] : memref<61xf32, #tpu.memory_space<smem>>
    %c40 = arith.constant 40 : index
    %40 = memref.load %arg1[%c40] : memref<61xf32, #tpu.memory_space<smem>>
    %c41 = arith.constant 41 : index
    %41 = memref.load %arg1[%c41] : memref<61xf32, #tpu.memory_space<smem>>
    %c42 = arith.constant 42 : index
    %42 = memref.load %arg1[%c42] : memref<61xf32, #tpu.memory_space<smem>>
    %c43 = arith.constant 43 : index
    %43 = memref.load %arg1[%c43] : memref<61xf32, #tpu.memory_space<smem>>
    %c44 = arith.constant 44 : index
    %44 = memref.load %arg1[%c44] : memref<61xf32, #tpu.memory_space<smem>>
    %c45 = arith.constant 45 : index
    %45 = memref.load %arg1[%c45] : memref<61xf32, #tpu.memory_space<smem>>
    %c46 = arith.constant 46 : index
    %46 = memref.load %arg1[%c46] : memref<61xf32, #tpu.memory_space<smem>>
    %c47 = arith.constant 47 : index
    %47 = memref.load %arg1[%c47] : memref<61xf32, #tpu.memory_space<smem>>
    %c48 = arith.constant 48 : index
    %48 = memref.load %arg1[%c48] : memref<61xf32, #tpu.memory_space<smem>>
    %c49 = arith.constant 49 : index
    %49 = memref.load %arg1[%c49] : memref<61xf32, #tpu.memory_space<smem>>
    %c50 = arith.constant 50 : index
    %50 = memref.load %arg1[%c50] : memref<61xf32, #tpu.memory_space<smem>>
    %c51 = arith.constant 51 : index
    %51 = memref.load %arg1[%c51] : memref<61xf32, #tpu.memory_space<smem>>
    %c52 = arith.constant 52 : index
    %52 = memref.load %arg1[%c52] : memref<61xf32, #tpu.memory_space<smem>>
    %c53 = arith.constant 53 : index
    %53 = memref.load %arg1[%c53] : memref<61xf32, #tpu.memory_space<smem>>
    %c54 = arith.constant 54 : index
    %54 = memref.load %arg1[%c54] : memref<61xf32, #tpu.memory_space<smem>>
    %c55 = arith.constant 55 : index
    %55 = memref.load %arg1[%c55] : memref<61xf32, #tpu.memory_space<smem>>
    %c56 = arith.constant 56 : index
    %56 = memref.load %arg1[%c56] : memref<61xf32, #tpu.memory_space<smem>>
    %c57 = arith.constant 57 : index
    %57 = memref.load %arg1[%c57] : memref<61xf32, #tpu.memory_space<smem>>
    %c58 = arith.constant 58 : index
    %58 = memref.load %arg1[%c58] : memref<61xf32, #tpu.memory_space<smem>>
    %c59 = arith.constant 59 : index
    %59 = memref.load %arg1[%c59] : memref<61xf32, #tpu.memory_space<smem>>
    %c60 = arith.constant 60 : index
    %60 = memref.load %arg1[%c60] : memref<61xf32, #tpu.memory_space<smem>>
    %c0_i32 = arith.constant 0 : i32
    %c0_i32_0 = arith.constant 0 : i32
    %c0_i32_1 = arith.constant 0 : i32
    %61 = tpu.memref_slice %arg2[%c0_i32, %c0_i32_0, %c0_i32_1] : memref<4x8x128xf32, #tpu.memory_space<vmem>> -> memref<1x8x128xf32, #tpu.memory_space<vmem>>
    %62 = tpu.memref_squeeze %61 : memref<1x8x128xf32, #tpu.memory_space<vmem>> -> memref<8x128xf32, #tpu.memory_space<vmem>>
    %c0_2 = arith.constant 0 : index
    %c0_3 = arith.constant 0 : index
    %63 = vector.load %62[%c0_2, %c0_3] : memref<8x128xf32, #tpu.memory_space<vmem>>, vector<8x128xf32>
    %c1_i32 = arith.constant 1 : i32
    %c0_i32_4 = arith.constant 0 : i32
    %c0_i32_5 = arith.constant 0 : i32
    %64 = tpu.memref_slice %arg2[%c1_i32, %c0_i32_4, %c0_i32_5] : memref<4x8x128xf32, #tpu.memory_space<vmem>> -> memref<1x8x128xf32, #tpu.memory_space<vmem>>
    %65 = tpu.memref_squeeze %64 : memref<1x8x128xf32, #tpu.memory_space<vmem>> -> memref<8x128xf32, #tpu.memory_space<vmem>>
    %c0_6 = arith.constant 0 : index
    %c0_7 = arith.constant 0 : index
    %66 = vector.load %65[%c0_6, %c0_7] : memref<8x128xf32, #tpu.memory_space<vmem>>, vector<8x128xf32>
    %c2_i32 = arith.constant 2 : i32
    %c0_i32_8 = arith.constant 0 : i32
    %c0_i32_9 = arith.constant 0 : i32
    %67 = tpu.memref_slice %arg2[%c2_i32, %c0_i32_8, %c0_i32_9] : memref<4x8x128xf32, #tpu.memory_space<vmem>> -> memref<1x8x128xf32, #tpu.memory_space<vmem>>
    %68 = tpu.memref_squeeze %67 : memref<1x8x128xf32, #tpu.memory_space<vmem>> -> memref<8x128xf32, #tpu.memory_space<vmem>>
    %c0_10 = arith.constant 0 : index
    %c0_11 = arith.constant 0 : index
    %69 = vector.load %68[%c0_10, %c0_11] : memref<8x128xf32, #tpu.memory_space<vmem>>, vector<8x128xf32>
    %c3_i32 = arith.constant 3 : i32
    %c0_i32_12 = arith.constant 0 : i32
    %c0_i32_13 = arith.constant 0 : i32
    %70 = tpu.memref_slice %arg2[%c3_i32, %c0_i32_12, %c0_i32_13] : memref<4x8x128xf32, #tpu.memory_space<vmem>> -> memref<1x8x128xf32, #tpu.memory_space<vmem>>
    %71 = tpu.memref_squeeze %70 : memref<1x8x128xf32, #tpu.memory_space<vmem>> -> memref<8x128xf32, #tpu.memory_space<vmem>>
    %c0_14 = arith.constant 0 : index
    %c0_15 = arith.constant 0 : index
    %72 = vector.load %71[%c0_14, %c0_15] : memref<8x128xf32, #tpu.memory_space<vmem>>, vector<8x128xf32>
    %73 = vector.broadcast %0 : f32 to vector<8x128xf32>
    %74 = arith.mulf %73, %63 : vector<8x128xf32>
    %75 = vector.broadcast %1 : f32 to vector<8x128xf32>
    %76 = arith.mulf %75, %66 : vector<8x128xf32>
    %77 = arith.addf %74, %76 : vector<8x128xf32>
    %78 = vector.broadcast %2 : f32 to vector<8x128xf32>
    %79 = arith.mulf %78, %69 : vector<8x128xf32>
    %80 = arith.addf %77, %79 : vector<8x128xf32>
    %81 = vector.broadcast %3 : f32 to vector<8x128xf32>
    %82 = arith.mulf %81, %72 : vector<8x128xf32>
    %83 = arith.addf %80, %82 : vector<8x128xf32>
    %84 = vector.broadcast %20 : f32 to vector<8x128xf32>
    %85 = arith.addf %83, %84 : vector<8x128xf32>
    %86 = math.tanh %85 : vector<8x128xf32>
    %87 = vector.broadcast %4 : f32 to vector<8x128xf32>
    %88 = arith.mulf %87, %63 : vector<8x128xf32>
    %89 = vector.broadcast %5 : f32 to vector<8x128xf32>
    %90 = arith.mulf %89, %66 : vector<8x128xf32>
    %91 = arith.addf %88, %90 : vector<8x128xf32>
    %92 = vector.broadcast %6 : f32 to vector<8x128xf32>
    %93 = arith.mulf %92, %69 : vector<8x128xf32>
    %94 = arith.addf %91, %93 : vector<8x128xf32>
    %95 = vector.broadcast %7 : f32 to vector<8x128xf32>
    %96 = arith.mulf %95, %72 : vector<8x128xf32>
    %97 = arith.addf %94, %96 : vector<8x128xf32>
    %98 = vector.broadcast %21 : f32 to vector<8x128xf32>
    %99 = arith.addf %97, %98 : vector<8x128xf32>
    %100 = math.tanh %99 : vector<8x128xf32>
    %101 = vector.broadcast %8 : f32 to vector<8x128xf32>
    %102 = arith.mulf %101, %63 : vector<8x128xf32>
    %103 = vector.broadcast %9 : f32 to vector<8x128xf32>
    %104 = arith.mulf %103, %66 : vector<8x128xf32>
    %105 = arith.addf %102, %104 : vector<8x128xf32>
    %106 = vector.broadcast %10 : f32 to vector<8x128xf32>
    %107 = arith.mulf %106, %69 : vector<8x128xf32>
    %108 = arith.addf %105, %107 : vector<8x128xf32>
    %109 = vector.broadcast %11 : f32 to vector<8x128xf32>
    %110 = arith.mulf %109, %72 : vector<8x128xf32>
    %111 = arith.addf %108, %110 : vector<8x128xf32>
    %112 = vector.broadcast %22 : f32 to vector<8x128xf32>
    %113 = arith.addf %111, %112 : vector<8x128xf32>
    %114 = math.tanh %113 : vector<8x128xf32>
    %115 = vector.broadcast %12 : f32 to vector<8x128xf32>
    %116 = arith.mulf %115, %63 : vector<8x128xf32>
    %117 = vector.broadcast %13 : f32 to vector<8x128xf32>
    %118 = arith.mulf %117, %66 : vector<8x128xf32>
    %119 = arith.addf %116, %118 : vector<8x128xf32>
    %120 = vector.broadcast %14 : f32 to vector<8x128xf32>
    %121 = arith.mulf %120, %69 : vector<8x128xf32>
    %122 = arith.addf %119, %121 : vector<8x128xf32>
    %123 = vector.broadcast %15 : f32 to vector<8x128xf32>
    %124 = arith.mulf %123, %72 : vector<8x128xf32>
    %125 = arith.addf %122, %124 : vector<8x128xf32>
    %126 = vector.broadcast %23 : f32 to vector<8x128xf32>
    %127 = arith.addf %125, %126 : vector<8x128xf32>
    %128 = math.tanh %127 : vector<8x128xf32>
    %129 = vector.broadcast %16 : f32 to vector<8x128xf32>
    %130 = arith.mulf %129, %63 : vector<8x128xf32>
    %131 = vector.broadcast %17 : f32 to vector<8x128xf32>
    %132 = arith.mulf %131, %66 : vector<8x128xf32>
    %133 = arith.addf %130, %132 : vector<8x128xf32>
    %134 = vector.broadcast %18 : f32 to vector<8x128xf32>
    %135 = arith.mulf %134, %69 : vector<8x128xf32>
    %136 = arith.addf %133, %135 : vector<8x128xf32>
    %137 = vector.broadcast %19 : f32 to vector<8x128xf32>
    %138 = arith.mulf %137, %72 : vector<8x128xf32>
    %139 = arith.addf %136, %138 : vector<8x128xf32>
    %140 = vector.broadcast %24 : f32 to vector<8x128xf32>
    %141 = arith.addf %139, %140 : vector<8x128xf32>
    %142 = math.tanh %141 : vector<8x128xf32>
    %143 = vector.broadcast %25 : f32 to vector<8x128xf32>
    %144 = arith.mulf %143, %86 : vector<8x128xf32>
    %145 = vector.broadcast %26 : f32 to vector<8x128xf32>
    %146 = arith.mulf %145, %100 : vector<8x128xf32>
    %147 = arith.addf %144, %146 : vector<8x128xf32>
    %148 = vector.broadcast %27 : f32 to vector<8x128xf32>
    %149 = arith.mulf %148, %114 : vector<8x128xf32>
    %150 = arith.addf %147, %149 : vector<8x128xf32>
    %151 = vector.broadcast %28 : f32 to vector<8x128xf32>
    %152 = arith.mulf %151, %128 : vector<8x128xf32>
    %153 = arith.addf %150, %152 : vector<8x128xf32>
    %154 = vector.broadcast %29 : f32 to vector<8x128xf32>
    %155 = arith.mulf %154, %142 : vector<8x128xf32>
    %156 = arith.addf %153, %155 : vector<8x128xf32>
    %157 = vector.broadcast %50 : f32 to vector<8x128xf32>
    %158 = arith.addf %156, %157 : vector<8x128xf32>
    %159 = math.tanh %158 : vector<8x128xf32>
    %160 = vector.broadcast %30 : f32 to vector<8x128xf32>
    %161 = arith.mulf %160, %86 : vector<8x128xf32>
    %162 = vector.broadcast %31 : f32 to vector<8x128xf32>
    %163 = arith.mulf %162, %100 : vector<8x128xf32>
    %164 = arith.addf %161, %163 : vector<8x128xf32>
    %165 = vector.broadcast %32 : f32 to vector<8x128xf32>
    %166 = arith.mulf %165, %114 : vector<8x128xf32>
    %167 = arith.addf %164, %166 : vector<8x128xf32>
    %168 = vector.broadcast %33 : f32 to vector<8x128xf32>
    %169 = arith.mulf %168, %128 : vector<8x128xf32>
    %170 = arith.addf %167, %169 : vector<8x128xf32>
    %171 = vector.broadcast %34 : f32 to vector<8x128xf32>
    %172 = arith.mulf %171, %142 : vector<8x128xf32>
    %173 = arith.addf %170, %172 : vector<8x128xf32>
    %174 = vector.broadcast %51 : f32 to vector<8x128xf32>
    %175 = arith.addf %173, %174 : vector<8x128xf32>
    %176 = math.tanh %175 : vector<8x128xf32>
    %177 = vector.broadcast %35 : f32 to vector<8x128xf32>
    %178 = arith.mulf %177, %86 : vector<8x128xf32>
    %179 = vector.broadcast %36 : f32 to vector<8x128xf32>
    %180 = arith.mulf %179, %100 : vector<8x128xf32>
    %181 = arith.addf %178, %180 : vector<8x128xf32>
    %182 = vector.broadcast %37 : f32 to vector<8x128xf32>
    %183 = arith.mulf %182, %114 : vector<8x128xf32>
    %184 = arith.addf %181, %183 : vector<8x128xf32>
    %185 = vector.broadcast %38 : f32 to vector<8x128xf32>
    %186 = arith.mulf %185, %128 : vector<8x128xf32>
    %187 = arith.addf %184, %186 : vector<8x128xf32>
    %188 = vector.broadcast %39 : f32 to vector<8x128xf32>
    %189 = arith.mulf %188, %142 : vector<8x128xf32>
    %190 = arith.addf %187, %189 : vector<8x128xf32>
    %191 = vector.broadcast %52 : f32 to vector<8x128xf32>
    %192 = arith.addf %190, %191 : vector<8x128xf32>
    %193 = math.tanh %192 : vector<8x128xf32>
    %194 = vector.broadcast %40 : f32 to vector<8x128xf32>
    %195 = arith.mulf %194, %86 : vector<8x128xf32>
    %196 = vector.broadcast %41 : f32 to vector<8x128xf32>
    %197 = arith.mulf %196, %100 : vector<8x128xf32>
    %198 = arith.addf %195, %197 : vector<8x128xf32>
    %199 = vector.broadcast %42 : f32 to vector<8x128xf32>
    %200 = arith.mulf %199, %114 : vector<8x128xf32>
    %201 = arith.addf %198, %200 : vector<8x128xf32>
    %202 = vector.broadcast %43 : f32 to vector<8x128xf32>
    %203 = arith.mulf %202, %128 : vector<8x128xf32>
    %204 = arith.addf %201, %203 : vector<8x128xf32>
    %205 = vector.broadcast %44 : f32 to vector<8x128xf32>
    %206 = arith.mulf %205, %142 : vector<8x128xf32>
    %207 = arith.addf %204, %206 : vector<8x128xf32>
    %208 = vector.broadcast %53 : f32 to vector<8x128xf32>
    %209 = arith.addf %207, %208 : vector<8x128xf32>
    %210 = math.tanh %209 : vector<8x128xf32>
    %211 = vector.broadcast %45 : f32 to vector<8x128xf32>
    %212 = arith.mulf %211, %86 : vector<8x128xf32>
    %213 = vector.broadcast %46 : f32 to vector<8x128xf32>
    %214 = arith.mulf %213, %100 : vector<8x128xf32>
    %215 = arith.addf %212, %214 : vector<8x128xf32>
    %216 = vector.broadcast %47 : f32 to vector<8x128xf32>
    %217 = arith.mulf %216, %114 : vector<8x128xf32>
    %218 = arith.addf %215, %217 : vector<8x128xf32>
    %219 = vector.broadcast %48 : f32 to vector<8x128xf32>
    %220 = arith.mulf %219, %128 : vector<8x128xf32>
    %221 = arith.addf %218, %220 : vector<8x128xf32>
    %222 = vector.broadcast %49 : f32 to vector<8x128xf32>
    %223 = arith.mulf %222, %142 : vector<8x128xf32>
    %224 = arith.addf %221, %223 : vector<8x128xf32>
    %225 = vector.broadcast %54 : f32 to vector<8x128xf32>
    %226 = arith.addf %224, %225 : vector<8x128xf32>
    %227 = math.tanh %226 : vector<8x128xf32>
    %228 = vector.broadcast %55 : f32 to vector<8x128xf32>
    %229 = arith.mulf %228, %159 : vector<8x128xf32>
    %230 = vector.broadcast %56 : f32 to vector<8x128xf32>
    %231 = arith.mulf %230, %176 : vector<8x128xf32>
    %232 = arith.addf %229, %231 : vector<8x128xf32>
    %233 = vector.broadcast %57 : f32 to vector<8x128xf32>
    %234 = arith.mulf %233, %193 : vector<8x128xf32>
    %235 = arith.addf %232, %234 : vector<8x128xf32>
    %236 = vector.broadcast %58 : f32 to vector<8x128xf32>
    %237 = arith.mulf %236, %210 : vector<8x128xf32>
    %238 = arith.addf %235, %237 : vector<8x128xf32>
    %239 = vector.broadcast %59 : f32 to vector<8x128xf32>
    %240 = arith.mulf %239, %227 : vector<8x128xf32>
    %241 = arith.addf %238, %240 : vector<8x128xf32>
    %242 = vector.broadcast %60 : f32 to vector<8x128xf32>
    %243 = arith.addf %241, %242 : vector<8x128xf32>
    %c0_16 = arith.constant 0 : index
    %c0_17 = arith.constant 0 : index
    %244 = vector.load %arg3[%c0_16, %c0_17] : memref<8x128xf32, #tpu.memory_space<vmem>>, vector<8x128xf32>
    tpu.vector_store %arg3[%c0_16, %c0_17], %243 {strides = array<i32>} : memref<8x128xf32, #tpu.memory_space<vmem>>, vector<8x128xf32>,
    return
  }
  func.func @transform_0(%arg0: i32, %arg1: memref<61xf32, #tpu.memory_space<smem>>) -> (i32, i32, i32) {
    %c0_i32 = arith.constant 0 : i32
    %c0_i32_0 = arith.constant 0 : i32
    %c0_i32_1 = arith.constant 0 : i32
    return %c0_i32, %arg0, %c0_i32_0 : i32, i32, i32
  }
  func.func @transform_1(%arg0: i32, %arg1: memref<61xf32, #tpu.memory_space<smem>>) -> (i32, i32) {
    %c0_i32 = arith.constant 0 : i32
    %c0_i32_0 = arith.constant 0 : i32
    return %arg0, %c0_i32 : i32, i32
  }
}

</mosaic_0001>

<bundles_post_ra>
// kernel: tpu_custom_call.1
= control target key start
LH: loop header
LB: loop body
LE: loop exit
PB: predicated region body
PF: predicated region fallthrough
CT: control target
= control target key end

     0   :  { %s712_s9 = smov [#allocation3]   ;;  %s1022_s0 = inlined_call_operand.hbm [shape: f32[61], index: 0, kind: input, shape index: {}]   ;;  %s1023_s1 = inlined_call_operand.hbm [shape: f32[4,16,128], index: 1, kind: input, shape index: {}]   ;;  %s1024_s2 = inlined_call_operand.hbm [shape: f32[16,128], index: 2, kind: output, shape index: {}]  }
   0x1   :  { %8 = dma.hbm_to_smem %s1022_s0, 16, %s712_s9, [#allocation2] }
   0x2   :  { %686 = dma.done.wait [#allocation2], 16 }
   0x3   :  { %687 = vsyncadd [#allocation2], 4294967280 }
   0x4   :  { %10 = sfence }
   0x5   :  { %11 = vsyncpa [#allocation5], 0 }
   0x6   :  { %13 = vsyncpa [#allocation5 + $0x1], 0 }
   0x7   :  { %14 = vsyncpa [#allocation6], 0 }
   0x8   :  { %16 = vsyncpa [#allocation6 + $0x1], 0  ;;  %s736_s12 = smov 0   ;;  %s738_s13 = smov 0  }
   0x9   :  { %s740_s14 = smov 0   ;;  %s742_s15 = smov 0  }
   0xa LB: > { %s757_s0 = sadd.s32 4294967295, %s710_s15   ;;  %s463_s16 = sadd.s32 4294967294, %s710_s15   ;;  %s710_s15 = sphi %s742_s15, %s1040_s15   ;;  %s706_s14 = sphi %s740_s14, %s1039_s14   ;;  %s702_s13 = sphi %s738_s13, %s1038_s13   ;;  %s698_s12 = sphi %s736_s12, %s1037_s12  }
   0xb   : > { %s761_s17 = sadd.s32 1, %s710_s15   ;;  %s29_s18 = sadd.s32 1, %s706_s14 }
   0xc   : > { %s26_s19 = ssub.s32 %s710_s15, %s761_s17  ;;  %p36_p0 = scmp.ne.s32.totalorder %s706_s14, %s702_s13 }
   0xd   : > { %p27_p1 = scmp.eq.s32.totalorder %s26_s19, 0  ;;  %p37_p2 = scmp.eq.s32.totalorder %s710_s15, 0 }
   0xe   : > { %p42_p3 = scmp.ne.s32.totalorder %s702_s13, %s698_s12  ;;  %p43_p4 = scmp.eq.s32.totalorder %s757_s0, 0 }
   0xf   : > { %s773_s20 = scalar_select %p27_p1, %s706_s14, %s29_s18  }
  0x10   : > { %p775_p5 = por %p37_p2, %p36_p0  ;;  %p779_p6 = por %p43_p4, %p42_p3 }
  0x11   : > { %p66_p7 = scmp.eq.s32.totalorder %s757_s0, 1  ;;  %p72_p8 = scmp.eq.s32.totalorder %s463_s16, 1 }
  0x12   : > { %s1028_s22 = scalar_select %p779_p6, 1, 0 }
  0x13   : > { %p550_p10 = scmp.lt.s32.totalorder %s710_s15, 2  ;;  %p786_p11 = por %p66_p7, %p36_p0 }
  0x14   : > { %p790_p12 = por %p72_p8, %p42_p3  ;;  %s92_s25 = sand.u32 1, %s706_s14  }
  0x15   : > { %s1029_s23 = scalar_select %p786_p11, 1, 0 }
  0x16   : > { %s1030_s24 = scalar_select %p790_p12, 1, 0 }
  0x17   : > { %s467_s26 = sshll.u32 %s710_s15, 7  ;;  %s466_s27 = sshll.u32 %s92_s25, 5 }
  0x18   : > { %s799_s30 = scalar_lea.hbm %s1023_s1, %s467_s26  ;;  %s96_s3 = scalar_lea.vmem [#allocation4], %s466_s27 }
  0x19   : > { %s102_s4 = sshll.u32 %s96_s3, 4  ;;  %p803_p13 = pnand %p550_p10, %p775_p5  ;;  %s807_s4 = int_to_ptr.vmem [resolvable:$true] %s102_s4 }
  0x1a   : > { %s810_s6 = scalar_lea.sflag [#allocation5], %s92_s25  ;;  %s616_s7 = scalar_lea.hbm %s799_s30, 512 }
  0x1b   : > { %p617_p1 = scmp.ne.s32.totalorder %s799_s30, %s616_s7  ;;  %p618_p2 = pneg %p803_p13 }
  0x1c   : > { %s621_s10 = scalar_lea.hbm %s1023_s1, 1024  ;;  %p622_p5 = scmp.lt.s32.totalorder %s799_s30, %s1023_s1 }
  0x1d   : > { %p619_p3 = pnand %p618_p2, %p617_p1  ;;  %p623_p7 = scmp.lt.s32.totalorder %s621_s10, %s616_s7 }
  0x1f   : > { %p620_p4 = pneg %p619_p3  ;;  %p624_p8 = por %p623_p7, %p622_p5 }
  0x21   : > { %p625_p10 = pnand %p624_p8, %p620_p4 }
  0x23   : > { %628 = shalt.err (!%p625_p10)
}
  0x24   : > { %s629_s18 = scalar_lea.vmem %s807_s4, 512  ;;  %s713_s19 = smov [#allocation4]  }
  0x25   : > { %p630_p9 = scmp.ne.s32.totalorder %s807_s4, %s629_s18  ;;  %s634_s21 = sshll.u32 %s713_s19, 4  ;;  %s635_s21 = int_to_ptr.vmem [resolvable:$false] %s634_s21 }
  0x26   : > { %s636_s25 = scalar_lea.vmem %s635_s21, 1024  ;;  %p637_p3 = scmp.lt.s32.totalorder %s807_s4, %s635_s21 }
  0x27   : > { %p632_p0 = pnand %p630_p9, %p618_p2  ;;  %p638_p12 = scmp.lt.s32.totalorder %s636_s25, %s629_s18 }
  0x29   : > { %p633_p1 = pneg %p632_p0  ;;  %p639_p11 = por %p638_p12, %p637_p3 }
  0x2b   : > { %p640_p6 = pnand %p639_p11, %p633_p1 }
  0x2d   : > { %643 = shalt.err (!%p640_p6)
}
  0x2e   : > { %s714_s26 = smov 256   ;;  %s715_s27 = smov 128  }
  0x2f   : > { %s716_s28 = smov 8   ;;  %p110_p9 = scmp.lt.s32.totalorder %s710_s15, 3 }
  0x30   : > { %545 = dma.hbm_to_vmem [thread:$0]  (!%p803_p13), %s799_s30, 512, %s807_s4, %s810_s6, %s714_s26, %s715_s27, %s716_s28  }
  0x31   : > { %p1032_p0 = scmp.ge.s32.totalorder %s710_s15, 1 }
  0x33   : > { %p111_p2 = pnand %p1032_p0, %p110_p9 }
  0x34   : > { %s835_s29 = sand.u32 (!%p111_p2), 1, %s702_s13   ;;  %p1033_p6 = scmp.ne.s32.totalorder (!%p111_p2), %s1028_s22, 0 }
  0x35   : > { %114 = sbr.rel (%p111_p2) target bundleno = 158 (0x9e), region = 24  ;;  %s469_s3 = sshll.u32 (!%p111_p2), %s835_s29, 5 }
  0x36   : > { %s117_s7 = scalar_lea.sflag (!%p111_p2), [#allocation5], %s835_s29  ;;  %s839_s8 = scalar_lea.vmem (!%p111_p2), [#allocation4], %s469_s3 }
  0x3a   : > { %689 = dma.done.wait (%p1033_p6), %s117_s7, 512  }
  0x3b   : > { %691 = vsyncadd (%p1033_p6), %s117_s7, 4294966784  ;;  %s139_s30 = sld [smem:[#allocation3]]  ;;  %v200_v0 = vld [vmem:[%s839_s8] sm:$0xff]  ;;  %v853_v1 = vld [vmem:[%s839_s8 + $0x8] sm:$0xff]  ;;  %p1034_p12 = scmp.ne.s32.totalorder %s1029_s23, 0 }
  0x3c   : > { %s471_s4 = sld [smem:[#allocation3 + $0x1]]  ;;  %v532_v5 = vld [vmem:[%s839_s8 + $0x10] sm:$0xff]  ;;  %v533_v19 = vld [vmem:[%s839_s8 + $0x18] sm:$0xff] }
  0x3d   : > { %s472_s5 = sld [smem:[#allocation3 + $0x2]] }
  0x3e   : > { %s845_s6 = sld [smem:[#allocation3 + $0x3]] }
  0x3f   : > { %s474_s9 = sld [smem:[#allocation3 + $0x4]] }
  0x40   : > { %s475_s10 = sld [smem:[#allocation3 + $0x5]] }
  0x41   : > { %s847_s11 = sld [smem:[#allocation3 + $0x6]]  ;;  %v207_v2 = vstv %s139_s30 }
  0x42   : > { %s849_s16 = sld [smem:[#allocation3 + $0x7]]  ;;  %v209_v3 = vstv %s471_s4  ;;  %v208_v6 = vmul.f32 %v207_v2, %v200_v0 }
  0x43   : > { %s478_s18 = sld [smem:[#allocation3 + $0x8]]  ;;  %v210_v7 = vmul.f32 %v853_v1, %v209_v3  ;;  %v212_v8 = vstv %s472_s5 }
  0x44   : > { %s479_s22 = sld [smem:[#allocation3 + $0x9]]  ;;  %v213_v13 = vmul.f32 %v532_v5, %v212_v8  ;;  %v215_v16 = vstv %s845_s6 }
  0x45   : > { %s480_s19 = sld [smem:[#allocation3 + $0xa]]  ;;  %v221_v4 = vstv %s474_s9  ;;  %v211_v15 = vadd.f32 %v210_v7, %v208_v6  ;;  %v216_v30 = vmul.f32 %v533_v19, %v215_v16 }
  0x46   : > { %s855_s21 = sld [smem:[#allocation3 + $0xb]]  ;;  %v223_v9 = vstv %s475_s10  ;;  %v222_v10 = vmul.f32 %v221_v4, %v200_v0 }
  0x47   : > { %s482_s25 = sld [smem:[#allocation3 + $0xc]]  ;;  %v224_v11 = vmul.f32 %v853_v1, %v223_v9  ;;  %v226_v12 = vstv %s847_s11  ;;  %v214_v29 = vadd.f32 %v213_v13, %v211_v15 }
  0x48   : > { %s860_s26 = sld [smem:[#allocation3 + $0xd]]  ;;  %v227_v21 = vmul.f32 %v532_v5, %v226_v12  ;;  %v229_v24 = vstv %s849_s16 }
  0x49   : > { %s863_s27 = sld [smem:[#allocation3 + $0xe]]  ;;  %v235_v14 = vstv %s478_s18  ;;  %v225_v20 = vadd.f32 %v224_v11, %v222_v10  ;;  %v230_v34 = vmul.f32 %v533_v19, %v229_v24  ;;  %v217_v44 = vadd.f32 %v216_v30, %v214_v29 }
  0x4a   : > { %s865_s28 = sld [smem:[#allocation3 + $0xf]]  ;;  %v236_v17 = vmul.f32 %v235_v14, %v200_v0  ;;  %v237_v18 = vstv %s479_s22 }
  0x4b   : > { %s868_s3 = sld [smem:[#allocation3 + $0x10]]  ;;  %v238_v22 = vmul.f32 %v853_v1, %v237_v18  ;;  %v240_v23 = vstv %s480_s19  ;;  %v228_v33 = vadd.f32 %v227_v21, %v225_v20 }
  0x4c   : > { %s872_s7 = sld [smem:[#allocation3 + $0x11]]  ;;  %v241_v25 = vmul.f32 %v532_v5, %v240_v23  ;;  %v243_v27 = vstv %s855_s21 }
  0x4d   : > { %s875_s30 = sld [smem:[#allocation3 + $0x12]]  ;;  %v239_v26 = vadd.f32 %v238_v22, %v236_v17  ;;  %v249_v28 = vstv %s482_s25  ;;  %v244_v38 = vmul.f32 %v533_v19, %v243_v27  ;;  %v231_v47 = vadd.f32 %v230_v34, %v228_v33 }
  0x4e   : > { %s878_s4 = sld [smem:[#allocation3 + $0x13]]  ;;  %v250_v31 = vmul.f32 %v249_v28, %v200_v0  ;;  %v251_v32 = vstv %s860_s26 }
  0x4f   : > { %s881_s8 = sld [smem:[#allocation3 + $0x14]]  ;;  %v252_v35 = vmul.f32 %v853_v1, %v251_v32  ;;  %v254_v36 = vstv %s863_s27  ;;  %v242_v37 = vadd.f32 %v241_v25, %v239_v26 }
  0x50   : > { %s885_s5 = sld [smem:[#allocation3 + $0x15]]  ;;  %v255_v39 = vmul.f32 %v532_v5, %v254_v36  ;;  %v257_v40 = vstv %s865_s28 }
  0x51   : > { %s888_s6 = sld [smem:[#allocation3 + $0x16]]  ;;  %v253_v41 = vadd.f32 %v252_v35, %v250_v31  ;;  %v258_v42 = vmul.f32 %v533_v19, %v257_v40  ;;  %v263_v43 = vstv %s868_s3  ;;  %v245_v51 = vadd.f32 %v244_v38, %v242_v37 }
  0x52   : > { %s891_s9 = sld [smem:[#allocation3 + $0x17]]  ;;  %v264_v45 = vmul.f32 %v263_v43, %v200_v0  ;;  %v265_v46 = vstv %s872_s7 }
  0x53   : > { %s894_s10 = sld [smem:[#allocation3 + $0x18]]  ;;  %v256_v48 = vadd.f32 %v255_v39, %v253_v41  ;;  %v266_v49 = vmul.f32 %v853_v1, %v265_v46  ;;  %v268_v50 = vstv %s875_s30 }
  0x54   : > { %s898_s11 = sld [smem:[#allocation3 + $0x19]]  ;;  %v269_v52 = vmul.f32 %v532_v5, %v268_v50  ;;  %v271_v53 = vstv %s878_s4 }
  0x55   : > { %s901_s16 = sld [smem:[#allocation3 + $0x1a]]  ;;  %v218_v54 = vstv %s881_s8  ;;  %v259_v55 = vadd.f32 %v258_v42, %v256_v48  ;;  %v267_v56 = vadd.f32 %v266_v49, %v264_v45  ;;  %v272_v57 = vmul.f32 %v533_v19, %v271_v53 }
  0x56   : > { %s904_s18 = sld [smem:[#allocation3 + $0x1b]]  ;;  %v219_v58 = vadd.f32 %v218_v54, %v217_v44  ;;  %v232_v59 = vstv %s885_s5 }
  0x57   : > { %s907_s22 = sld [smem:[#allocation3 + $0x1c]]  ;;  %v233_v60 = vadd.f32 %v232_v59, %v231_v47  ;;  %v246_v61 = vstv %s888_s6  ;;  %v270_v62 = vadd.f32 %v269_v52, %v267_v56 }
  0x58   : > { %s910_s19 = sld [smem:[#allocation3 + $0x1d]]  ;;  %588 = vtanh.f32 %v219_v58  ;;  %v247_v63 = vadd.f32 %v246_v61, %v245_v51  ;;  %v260_v0 = vstv %s891_s9 }
  0x59   : > { %s913_s21 = sld [smem:[#allocation3 + $0x1e]]  ;;  %590 = vtanh.f32 %v233_v60  ;;  %v261_v1 = vadd.f32 %v260_v0, %v259_v55  ;;  %v273_v2 = vadd.f32 %v272_v57, %v270_v62  ;;  %v274_v3 = vstv %s894_s10 }
  0x5a   : > { %s916_s25 = sld [smem:[#allocation3 + $0x1f]]  ;;  %592 = vtanh.f32 %v247_v63  ;;  %v277_v5 = vstv %s898_s11 }
  0x5b   : > { %s918_s26 = sld [smem:[#allocation3 + $0x20]]  ;;  %594 = vtanh.f32 %v261_v1  ;;  %v275_v4 = vadd.f32 %v274_v3, %v273_v2  ;;  %v279_v6 = vstv %s901_s16 }
  0x5c   : > { %s920_s27 = sld [smem:[#allocation3 + $0x21]]  ;;  %v282_v7 = vstv %s904_s18 }
  0x5d   : > { %s922_s28 = sld [smem:[#allocation3 + $0x22]]  ;;  %596 = vtanh.f32 %v275_v4  ;;  %v285_v9 = vstv %s907_s22 }
  0x5e   : > { %s505_s3 = sld [smem:[#allocation3 + $0x23]]  ;;  %v288_v10 = vstv %s910_s19 }
  0x5f   : > { %s506_s7 = sld [smem:[#allocation3 + $0x24]]  ;;  %v294_v8 = vstv %s913_s21 }
  0x60   : > { %s924_s30 = sld [smem:[#allocation3 + $0x25]]  ;;  %v296_v11 = vstv %s916_s25 }
  0x61   : > { %s926_s4 = sld [smem:[#allocation3 + $0x26]]  ;;  %v299_v14 = vstv %s918_s26 }
  0x62   : > { %s928_s8 = sld [smem:[#allocation3 + $0x27]]  ;;  %v302_v15 = vstv %s920_s27 }
  0x63   : > { %s930_s5 = sld [smem:[#allocation3 + $0x28]]  ;;  %v305_v16 = vstv %s922_s28 }
  0x64   : > { %s936_s6 = sld [smem:[#allocation3 + $0x29]]  ;;  %v311_v12 = vstv %s505_s3 }
  0x65   : > { %v589_v13 = vpop.eup %588  ;;  %s941_s9 = sld [smem:[#allocation3 + $0x2a]]  ;;  %v313_v17 = vstv %s506_s7 }
  0x66   : > { %v946_v18 = vpop.eup %590  ;;  %s948_s10 = sld [smem:[#allocation3 + $0x2b]]  ;;  %v278_v19 = vmul.f32 %v589_v13, %v277_v5  ;;  %v295_v20 = vmul.f32 %v589_v13, %v294_v8  ;;  %v312_v21 = vmul.f32 %v589_v13, %v311_v12  ;;  %v316_v22 = vstv %s924_s30 }
  0x67   : > { %v593_v23 = vpop.eup %592  ;;  %s951_s11 = sld [smem:[#allocation3 + $0x2c]]  ;;  %v280_v24 = vmul.f32 %v946_v18, %v279_v6  ;;  %v297_v25 = vmul.f32 %v946_v18, %v296_v11  ;;  %v314_v26 = vmul.f32 %v946_v18, %v313_v17  ;;  %v319_v27 = vstv %s926_s4 }
  0x68   : > { %v595_v28 = vpop.eup %594  ;;  %s957_s16 = sld [smem:[#allocation3 + $0x2d]]  ;;  %v283_v29 = vmul.f32 %v593_v23, %v282_v7  ;;  %v300_v30 = vmul.f32 %v593_v23, %v299_v14  ;;  %v317_v31 = vmul.f32 %v593_v23, %v316_v22  ;;  %v322_v32 = vstv %s928_s8 }
  0x69   : > { %s960_s18 = sld [smem:[#allocation3 + $0x2e]]  ;;  %v281_v33 = vadd.f32 %v280_v24, %v278_v19  ;;  %v286_v34 = vmul.f32 %v595_v28, %v285_v9  ;;  %v298_v35 = vadd.f32 %v297_v25, %v295_v20  ;;  %v303_v36 = vmul.f32 %v595_v28, %v302_v15 }
  0x6a   : > { %v597_v37 = vpop.eup %596  ;;  %s962_s22 = sld [smem:[#allocation3 + $0x2f]]  ;;  %v315_v38 = vadd.f32 %v314_v26, %v312_v21  ;;  %v320_v39 = vmul.f32 %v595_v28, %v319_v27  ;;  %v328_v40 = vstv %s930_s5  ;;  %v330_v41 = vstv %s936_s6 }
  0x6b   : > { %s966_s19 = sld [smem:[#allocation3 + $0x30]]  ;;  %v284_v42 = vadd.f32 %v283_v29, %v281_v33  ;;  %v289_v43 = vmul.f32 %v597_v37, %v288_v10  ;;  %v301_v44 = vadd.f32 %v300_v30, %v298_v35  ;;  %v306_v45 = vmul.f32 %v597_v37, %v305_v16 }
  0x6c   : > { %s968_s21 = sld [smem:[#allocation3 + $0x31]]  ;;  %v318_v46 = vadd.f32 %v317_v31, %v315_v38  ;;  %v323_v47 = vmul.f32 %v597_v37, %v322_v32  ;;  %v329_v48 = vmul.f32 %v589_v13, %v328_v40  ;;  %v331_v49 = vmul.f32 %v946_v18, %v330_v41 }
  0x6d   : > { %s971_s25 = sld [smem:[#allocation3 + $0x32]]  ;;  %v287_v50 = vadd.f32 %v286_v34, %v284_v42  ;;  %v304_v51 = vadd.f32 %v303_v36, %v301_v44  ;;  %v333_v52 = vstv %s941_s9  ;;  %v336_v53 = vstv %s948_s10  ;;  %s470_s9 = sshll.u32 %s835_s29, 3 }
  0x6e   : > { %s521_s26 = sld [smem:[#allocation3 + $0x33]]  ;;  %v321_v54 = vadd.f32 %v320_v39, %v318_v46  ;;  %v332_v55 = vadd.f32 %v331_v49, %v329_v48  ;;  %v334_v56 = vmul.f32 %v593_v23, %v333_v52  ;;  %v337_v57 = vmul.f32 %v595_v28, %v336_v53  ;;  %s535_s10 = sshll.u32 %s757_s0, 7 }
  0x6f   : > { %s522_s27 = sld [smem:[#allocation3 + $0x34]]  ;;  %v339_v58 = vstv %s951_s11  ;;  %v345_v59 = vstv %s957_s16  ;;  %v290_v60 = vadd.f32 %v289_v43, %v287_v50  ;;  %v307_v0 = vadd.f32 %v306_v45, %v304_v51  ;;  %s138_s11 = scalar_lea.vmem [#allocation7], %s470_s9 }
  0x70   : > { %s523_s28 = sld [smem:[#allocation3 + $0x35]]  ;;  %v335_v61 = vadd.f32 %v334_v56, %v332_v55  ;;  %v340_v62 = vmul.f32 %v597_v37, %v339_v58  ;;  %v346_v63 = vmul.f32 %v589_v13, %v345_v59  ;;  %v347_v1 = vstv %s960_s18  ;;  %s393_s16 = sshll.u32 %s138_s11, 4  ;;  %s394_s16 = int_to_ptr.vmem [resolvable:$true] %s393_s16 }
  0x71   : > { %s977_s3 = sld [smem:[#allocation3 + $0x36]]  ;;  %v350_v2 = vstv %s962_s22  ;;  %v353_v3 = vstv %s966_s19  ;;  %v324_v4 = vadd.f32 %v323_v47, %v321_v54  ;;  %v348_v6 = vmul.f32 %v946_v18, %v347_v1  ;;  %s391_s19 = scalar_lea.hbm %s1024_s2, %s535_s10 }
  0x72   : > { %v338_v5 = vadd.f32 %v337_v57, %v335_v61  ;;  %v351_v7 = vmul.f32 %v593_v23, %v350_v2  ;;  %v354_v9 = vmul.f32 %v595_v28, %v353_v3  ;;  %v356_v10 = vstv %s968_s21  ;;  %s525_s7 = sld [smem:[#allocation3 + $0x37]]  ;;  %s380_s21 = scalar_lea.sflag [#allocation6], %s835_s29 }
  0x73   : > { %v291_v8 = vstv %s971_s25  ;;  %v349_v15 = vadd.f32 %v348_v6, %v346_v63  ;;  %v357_v17 = vmul.f32 %v597_v37, %v356_v10  ;;  %s526_s30 = sld [smem:[#allocation3 + $0x38]]  ;;  %s644_s25 = scalar_lea.vmem %s394_s16, 128 }
  0x74   : > { %v292_v11 = vadd.f32 %v291_v8, %v290_v60  ;;  %v308_v12 = vstv %s521_s26  ;;  %v341_v14 = vadd.f32 %v340_v62, %v338_v5  ;;  %s527_s4 = sld [smem:[#allocation3 + $0x39]]  ;;  %p645_p11 = scmp.ne.s32.totalorder %s394_s16, %s644_s25 }
  0x75   : > { %v309_v13 = vadd.f32 %v308_v12, %v307_v0  ;;  %v325_v16 = vstv %s522_s27  ;;  %v352_v21 = vadd.f32 %v351_v7, %v349_v15  ;;  %s528_s8 = sld [smem:[#allocation3 + $0x3a]]  ;;  %s717_s26 = smov [#allocation7]  }
  0x76   : > { %598 = vtanh.f32 %v292_v11  ;;  %v326_v19 = vadd.f32 %v325_v16, %v324_v4  ;;  %v342_v20 = vstv %s523_s28  ;;  %s529_s5 = sld [smem:[#allocation3 + $0x3b]]  ;;  %p646_p13 = pnand %p645_p11, %p1034_p12 }
  0x77   : > { %600 = vtanh.f32 %v309_v13  ;;  %v343_v22 = vadd.f32 %v342_v20, %v341_v14  ;;  %v355_v18 = vadd.f32 %v354_v9, %v352_v21  ;;  %v359_v23 = vstv %s977_s3  ;;  %s530_s6 = sld [smem:[#allocation3 + $0x3c]]  ;;  %s648_s27 = sshll.u32 %s717_s26, 4  ;;  %s649_s27 = int_to_ptr.vmem [resolvable:$false] %s648_s27 }
  0x78   : > { %602 = vtanh.f32 %v326_v19  ;;  %v362_v26 = vstv %s525_s7  ;;  %p647_p4 = pneg %p646_p13  ;;  %s650_s0 = scalar_lea.vmem %s649_s27, 256 }
  0x79   : > { %604 = vtanh.f32 %v343_v22  ;;  %v358_v24 = vadd.f32 %v357_v17, %v355_v18  ;;  %v364_v27 = vstv %s526_s30  ;;  %p651_p5 = scmp.lt.s32.totalorder %s394_s16, %s649_s27  ;;  %p652_p7 = scmp.lt.s32.totalorder %s650_s0, %s644_s25 }
  0x7a   : > { %v367_v29 = vstv %s527_s4 }
  0x7b   : > { %v360_v25 = vadd.f32 %v359_v23, %v358_v24  ;;  %v370_v32 = vstv %s528_s8  ;;  %p653_p8 = por %p652_p7, %p651_p5 }
  0x7c   : > { %v373_v40 = vstv %s529_s5 }
  0x7d   : > { %606 = vtanh.f32 %v360_v25  ;;  %v376_v44 = vstv %s530_s6  ;;  %p654_p10 = pnand %p653_p8, %p647_p4 }
  0x83   : > { %v599_v28 = vpop.eup %598 }
  0x84   : > { %v601_v30 = vpop.eup %600  ;;  %v363_v31 = vmul.f32 %v599_v28, %v362_v26 }
  0x85   : > { %v603_v33 = vpop.eup %602  ;;  %v365_v34 = vmul.f32 %v601_v30, %v364_v27 }
  0x86   : > { %v605_v35 = vpop.eup %604  ;;  %v368_v36 = vmul.f32 %v603_v33, %v367_v29 }
  0x87   : > { %v366_v37 = vadd.f32 %v365_v34, %v363_v31  ;;  %v371_v38 = vmul.f32 %v605_v35, %v370_v32 }
  0x89   : > { %v369_v39 = vadd.f32 %v368_v36, %v366_v37 }
  0x8a   : > { %v607_v41 = vpop.eup %606 }
  0x8b   : > { %v372_v42 = vadd.f32 %v371_v38, %v369_v39  ;;  %v374_v43 = vmul.f32 %v607_v41, %v373_v40 }
  0x8d   : > { %v375_v45 = vadd.f32 %v374_v43, %v372_v42 }
  0x8f   : > { %v377_v46 = vadd.f32 %v376_v44, %v375_v45 }
  0x91   : > { %378 = vst [vmem:[%s138_s11] sm:$0xff] %v377_v46 }
  0x92   : > { %657 = shalt.err (!%p654_p10)
}
  0x93   : > { %s658_s28 = scalar_lea.hbm %s391_s19, 128  ;;  %s662_s7 = scalar_lea.hbm %s1024_s2, 256 }
  0x94   : > { %p659_p1 = scmp.ne.s32.totalorder %s391_s19, %s658_s28  ;;  %p663_p0 = scmp.lt.s32.totalorder %s391_s19, %s1024_s2 }
  0x95   : > { %p664_p2 = scmp.lt.s32.totalorder %s662_s7, %s658_s28 }
  0x96   : > { %p660_p3 = pnand %p659_p1, %p1034_p12 }
  0x97   : > { %p665_p6 = por %p664_p2, %p663_p0 }
  0x98   : > { %p661_p9 = pneg %p660_p3 }
  0x9a   : > { %p666_p11 = pnand %p665_p6, %p661_p9 }
  0x9c   : > { %669 = shalt.err (!%p666_p11)
}
  0x9d   : > { %540 = dma.vmem_to_hbm [thread:$0]  (%p1034_p12), %s394_s16, 128, %s391_s19, %s380_s21  }
  0x9e PF: > { %s405_s8 = sand.u32 1, %s698_s12   ;;  %p1035_p13 = scmp.ne.s32.totalorder %s1030_s24, 0 }
  0x9f   : > { %p1036_p4 = scmp.ge.s32.totalorder %s710_s15, 2  ;;  %s406_s5 = scalar_lea.sflag [#allocation6], %s405_s8 }
  0xa1   : > { %p547_p5 = pnand %p1036_p4, %p1035_p13 }
  0xa3   : > { %p548_p7 = pneg %p547_p5 }
  0xa5   : > { %693 = dma.done.wait (%p548_p7), %s406_s5, 128  }
  0xa6   : > { %695 = vsyncadd (%p548_p7), %s406_s5, 4294967168  ;;  %p19_p8 = scmp.ge.s32.totalorder %s761_s17, 4   ;;  %s1037_s12 = smov %s702_s13 }
  0xa7   : > { %s1038_s13 = smov %s706_s14  ;;  %s1039_s14 = smov %s773_s20 }
  0xa8   : > { %s1040_s15 = smov %s761_s17  ;;  %21 = sbr.rel (!%p19_p8) target bundleno = 10 (0xa), region = 72 }
  0xad   :  { %411 = vsyncpa [#allocation5], 1 }
  0xae   :  { %413 = vsyncpa [#allocation5 + $0x1], 1 }
  0xaf   :  { %414 = vsyncpa [#allocation6], 1 }
  0xb0   :  { %416 = vsyncpa [#allocation6 + $0x1], 1 }

</bundles_post_ra>
